<compile_context>
chip_gen: v7x
topology: tpu7x:2x2x1
jax: 0.10.0
libtpu: 0.0.40
codegen_flags: <defaults>
</compile_context>

<pallas_src>
import functools

import jax
import jax.numpy as jnp
from jax.experimental import pallas as pl
from jax.experimental.pallas import tpu as pltpu


def _round_up(x: int, m: int) -> int:
    return ((x + m - 1) // m) * m


def _mse_partial_kernel(x_ref, t_ref, acc_ref):
    """Accumulates sum((x - one_hot)^2) of one (tile_rows, 128) tile into the
    (8, 128) f32 output block that is resident across the reduction axis."""
    i = pl.program_id(1)  # reduction ("arbitrary") axis

    @pl.when(i == 0)
    def _():
        acc_ref[...] = jnp.zeros_like(acc_ref)

    x = x_ref[...].astype(jnp.float32)      # (tile_rows, 128), upcast in VMEM
    t = t_ref[...].astype(jnp.int32)        # (tile_rows, 128) labels (int8 in HBM)

    # Flat element f = row*128 + lane maps to (sample f//2, class f%2); since
    # 128 is even, class == lane parity.  Padded lanes carry label -1 -> 0.
    cls = jax.lax.broadcasted_iota(jnp.int32, x.shape, dimension=1) & 1
    one_hot = (cls == t).astype(jnp.float32)

    diff = x - one_hot
    sq = diff * diff
    # Fold (tile_rows, 128) -> (8, 128): vreg-wise adds only (pure VPU, the
    # free slot in this mem-bound kernel); the single XLU reduce happens once
    # in the wrapper on the tiny partial slab.
    acc_ref[...] += sq.reshape(sq.shape[0] // 8, 8, 128).sum(axis=0)


def loss_mse(output: jax.Array, target: jax.Array, *,
             max_tile_rows: int = 512, num_cores: int = 2) -> jax.Array:
    """Mean Squared Error against a 2-class one-hot of `target`.

    output: (N, 2) float (f32 or bf16)
    target: (N,)   integer labels in {0, 1}
    returns: scalar float32
    """
    n, c = output.shape
    assert c == 2, "LossMSE builds a (N, 2) one-hot target"
    total = n * c
    lanes = 128

    rows = pl.cdiv(total, lanes)
    # Tile rows: multiple of 32 (safe sublane packing for int8/bf16/f32),
    # roughly rows/num_cores for small inputs, capped for pipelining.
    tile_rows = min(max_tile_rows, _round_up(max(pl.cdiv(rows, num_cores), 1), 32))
    rows_padded = _round_up(rows, num_cores * tile_rows)
    tiles_per_core = rows_padded // (num_cores * tile_rows)
    padded_total = rows_padded * lanes

    # Lane-dense activation stream in its *native* dtype (no wrapper upcast).
    flat = output.reshape(-1)
    flat = jnp.pad(flat, (0, padded_total - total))
    x2d = flat.reshape(rows_padded, lanes)

    # int8 labels repeated per class; pad with -1 so padded lanes give zero
    # one-hot (and the zero-padded activations then contribute 0 to the sum).
    tgt_rep = jnp.broadcast_to(target.astype(jnp.int8).reshape(n, 1), (n, c)).reshape(-1)
    tgt_rep = jnp.pad(tgt_rep, (0, padded_total - total), constant_values=-1)
    t2d = tgt_rep.reshape(rows_padded, lanes)

    in_map = lambda cg, i: (cg * tiles_per_core + i, 0)

    partials = pl.pallas_call(
        _mse_partial_kernel,
        out_shape=jax.ShapeDtypeStruct((num_cores * 8, lanes), jnp.float32),
        grid=(num_cores, tiles_per_core),
        in_specs=[
            pl.BlockSpec((tile_rows, lanes), in_map),   # activations
            pl.BlockSpec((tile_rows, lanes), in_map),   # int8 labels
        ],
        out_specs=pl.BlockSpec((8, lanes), lambda cg, i: (cg, 0)),
        compiler_params=pltpu.CompilerParams(
            dimension_semantics=("parallel", "arbitrary")),
    )(x2d, t2d)

    # Final cross-lane reduce over the tiny (num_cores*8, 128) partial slab
    # and the single divide by the true element count.
    return jnp.sum(partials) / jnp.float32(total)


if __name__ == "__main__":
    key = jax.random.PRNGKey(0)
    k_out, k_tgt, k_out2, k_tgt2 = jax.random.split(key, 4)

    # Small shape consistent with the module: batch N=8, class dim fixed at 2.
    N = 8
    output = jax.random.normal(k_out, (N, 2), dtype=jnp.float32)
    target = jax.random.randint(k_tgt, (N,), 0, 2, dtype=jnp.int32)

    loss = loss_mse(output, target)
    jax.block_until_ready(loss)

    one_hot_ref = jax.nn.one_hot(target, 2, dtype=jnp.float32)
    ref = jnp.mean((output - one_hot_ref) ** 2)
    assert jnp.allclose(loss, ref, rtol=1e-6, atol=1e-6), (loss, ref)

    # Second check: bf16 activations + multi-tile reduction path (grid > 1
    # along the "arbitrary" axis) to validate the accumulator pipeline.
    N2 = 8192
    output2 = jax.random.normal(k_out2, (N2, 2), dtype=jnp.bfloat16)
    target2 = jax.random.randint(k_tgt2, (N2,), 0, 2, dtype=jnp.int32)
    loss2 = loss_mse(output2, target2, max_tile_rows=32)
    jax.block_until_ready(loss2)

    one_hot2 = jax.nn.one_hot(target2, 2, dtype=jnp.float32)
    ref2 = jnp.mean((output2.astype(jnp.float32) - one_hot2) ** 2)
    assert jnp.allclose(loss2, ref2, rtol=1e-3, atol=1e-3), (loss2, ref2)

    print("KERNEL_OK")
</pallas_src>

<mosaic_0001>
module attributes {stable_mosaic.version = 11 : i64} {
  func.func @_mse_partial_kernel(%arg0: i32, %arg1: i32, %arg2: memref<32x128xf32, #tpu.memory_space<vmem>>, %arg3: memref<32x128xi8, #tpu.memory_space<vmem>>, %arg4: memref<8x128xf32, #tpu.memory_space<vmem>>) attributes {dimension_semantics = [#tpu.dimension_semantics<parallel>, #tpu.dimension_semantics<arbitrary>], iteration_bounds = array<i64: 2, 1>, scalar_prefetch = 0 : i64, scratch_operands = 0 : i64, tpu.core_type = #tpu.core_type<tc>, window_params = [{transform_indices = @transform_0, window_bounds = array<i64: 32, 128>}, {transform_indices = @transform_1, window_bounds = array<i64: 32, 128>}, {transform_indices = @transform_2, window_bounds = array<i64: 8, 128>}]} {
    %c0_i32 = arith.constant 0 : i32
    %0 = arith.cmpi eq, %arg1, %c0_i32 : i32
    %1 = arith.extui %0 : i1 to i32
    %c0_i32_0 = arith.constant 0 : i32
    %2 = arith.cmpi ne, %1, %c0_i32_0 : i32
    scf.if %2 {
      %cst_8 = arith.constant 0.000000e+00 : f32
      %19 = vector.broadcast %cst_8 : f32 to vector<8x128xf32>
      %c0_9 = arith.constant 0 : index
      %c0_10 = arith.constant 0 : index
      %20 = vector.load %arg4[%c0_9, %c0_10] : memref<8x128xf32, #tpu.memory_space<vmem>>, vector<8x128xf32>
      tpu.vector_store %arg4[%c0_9, %c0_10], %19 {strides = array<i32>} : memref<8x128xf32, #tpu.memory_space<vmem>>, vector<8x128xf32>,
    } else {
    }
    %c0 = arith.constant 0 : index
    %c0_1 = arith.constant 0 : index
    %3 = vector.load %arg2[%c0, %c0_1] : memref<32x128xf32, #tpu.memory_space<vmem>>, vector<32x128xf32>
    %c0_2 = arith.constant 0 : index
    %c0_3 = arith.constant 0 : index
    %4 = vector.load %arg3[%c0_2, %c0_3] : memref<32x128xi8, #tpu.memory_space<vmem>>, vector<32x128xi8>
    %5 = arith.extsi %4 : vector<32x128xi8> to vector<32x128xi32>
    %6 = tpu.iota {dimensions = array<i32: 1>} : vector<32x128xi32>
    %c1_i32 = arith.constant 1 : i32
    %7 = vector.broadcast %c1_i32 : i32 to vector<32x128xi32>
    %8 = arith.andi %6, %7 : vector<32x128xi32>
    %9 = arith.cmpi eq, %8, %5 : vector<32x128xi32>
    %10 = arith.extui %9 : vector<32x128xi1> to vector<32x128xi32>
    %11 = arith.sitofp %10 : vector<32x128xi32> to vector<32x128xf32>
    %12 = arith.subf %3, %11 : vector<32x128xf32>
    %13 = arith.mulf %12, %12 : vector<32x128xf32>
    %c0_4 = arith.constant 0 : index
    %c0_5 = arith.constant 0 : index
    %14 = vector.load %arg4[%c0_4, %c0_5] : memref<8x128xf32, #tpu.memory_space<vmem>>, vector<8x128xf32>
    %15 = vector.shape_cast %13 : vector<32x128xf32> to vector<4x8x128xf32>
    %cst = arith.constant dense<0.000000e+00> : vector<8x128xf32>
    %16 = vector.multi_reduction <add>, %15, %cst [0] : vector<4x8x128xf32> to vector<8x128xf32>
    %17 = arith.addf %14, %16 : vector<8x128xf32>
    %c0_6 = arith.constant 0 : index
    %c0_7 = arith.constant 0 : index
    %18 = vector.load %arg4[%c0_6, %c0_7] : memref<8x128xf32, #tpu.memory_space<vmem>>, vector<8x128xf32>
    tpu.vector_store %arg4[%c0_6, %c0_7], %17 {strides = array<i32>} : memref<8x128xf32, #tpu.memory_space<vmem>>, vector<8x128xf32>,
    return
  }
  func.func @transform_0(%arg0: i32, %arg1: i32) -> (i32, i32) {
    %c1_i32 = arith.constant 1 : i32
    %0 = arith.muli %arg0, %c1_i32 : i32
    %1 = arith.addi %0, %arg1 : i32
    %c0_i32 = arith.constant 0 : i32
    %c0_i32_0 = arith.constant 0 : i32
    return %1, %c0_i32 : i32, i32
  }
  func.func @transform_1(%arg0: i32, %arg1: i32) -> (i32, i32) {
    %c1_i32 = arith.constant 1 : i32
    %0 = arith.muli %arg0, %c1_i32 : i32
    %1 = arith.addi %0, %arg1 : i32
    %c0_i32 = arith.constant 0 : i32
    %c0_i32_0 = arith.constant 0 : i32
    return %1, %c0_i32 : i32, i32
  }
  func.func @transform_2(%arg0: i32, %arg1: i32) -> (i32, i32) {
    %c0_i32 = arith.constant 0 : i32
    %c0_i32_0 = arith.constant 0 : i32
    return %arg0, %c0_i32 : i32, i32
  }
}

</mosaic_0001>

<bundles_post_ra>
// kernel: tpu_custom_call.1
= control target key start
LH: loop header
LB: loop body
LE: loop exit
PB: predicated region body
PF: predicated region fallthrough
CT: control target
= control target key end

     0   :  { %7 = vsyncpa [#allocation3], 0  ;;  %s860_s0 = inlined_call_operand.hbm [shape: f32[64,128], index: 0, kind: input, shape index: {}]   ;;  %s861_s1 = inlined_call_operand.hbm [shape: s8[64,128], index: 1, kind: input, shape index: {}]   ;;  %s862_s2 = inlined_call_operand.hbm [shape: f32[16,128], index: 2, kind: output, shape index: {}]  }
   0x1   :  { %9 = vsyncpa [#allocation3 + $0x1], 0 }
   0x2   :  { %10 = vsyncpa [#allocation6], 0 }
   0x3   :  { %12 = vsyncpa [#allocation6 + $0x1], 0 }
   0x4   :  { %13 = vsyncpa [#allocation4], 0 }
   0x5   :  { %15 = vsyncpa [#allocation4 + $0x1], 0  ;;  %s641_s9 = smov 0   ;;  %s643_s10 = smov 0  }
   0x6   :  { %s645_s11 = smov 0   ;;  %s647_s12 = smov 0  }
   0x7   :  { %s649_s13 = smov 0   ;;  %s651_s14 = smov 0  }
   0x8 LB: > { %s380_s15 = sadd.s32 4294967295, %s618_s14   ;;  %s381_s16 = sadd.s32 4294967294, %s618_s14   ;;  %s618_s14 = sphi %s651_s14, %s21_s14   ;;  %s614_s13 = sphi %s649_s13, %s881_s13   ;;  %s610_s12 = sphi %s647_s12, %s880_s12   ;;  %s606_s11 = sphi %s645_s11, %s879_s11   ;;  %s602_s10 = sphi %s643_s10, %s878_s10   ;;  %s598_s9 = sphi %s641_s9, %s877_s9  }
   0x9   : > { %s33_s17 = sadd.s32 1, %s614_s13  ;;  %s42_s18 = sadd.s32 1, %s606_s11 }
   0xa   : > { %p35_p0 = scmp.ge.s32.totalorder %s33_s17, 2  ;;  %p49_p1 = scmp.ne.s32.totalorder %s606_s11, %s602_s10 }
   0xb   : > { %p50_p2 = scmp.eq.s32.totalorder %s618_s14, 0  ;;  %p55_p3 = scmp.ne.s32.totalorder %s602_s10, %s598_s9 }
   0xc   : > { %s883_s17 = smov (%p35_p0, %s33_s17), 0  ;;  %p56_p5 = scmp.eq.s32.totalorder %s380_s15, 0 }
   0xd   : > { %p682_p4 = por %p50_p2, %p49_p1  ;;  %s39_s20 = ssub.s32 %s614_s13, %s883_s17 }
   0xe   : > { %p107_p6 = scmp.eq.s32.totalorder %s380_s15, 1  ;;  %p40_p7 = scmp.eq.s32.totalorder %s39_s20, 0 }
   0xf   : > { %p688_p8 = por %p56_p5, %p55_p3  ;;  %p113_p10 = scmp.eq.s32.totalorder %s381_s16, 1 }
  0x10   : > { %p692_p9 = por %p107_p6, %p49_p1  ;;  %p419_p13 = scmp.lt.s32.totalorder %s618_s14, 2 }
  0x11   : > { %s866_s21 = scalar_select %p688_p8, 1, 0 }
  0x12   : > { %s867_s22 = scalar_select %p692_p9, 1, 0 }
  0x13   : > { %s697_s23 = scalar_select %p40_p7, %s606_s11, %s42_s18  }
  0x14   : > { %p699_p11 = por %p113_p10, %p55_p3  ;;  %s706_s25 = sand.u32 1, %s606_s11  }
  0x15   : > { %s384_s26 = sshll.u32 %s706_s25, 5  ;;  %s401_s27 = sshll.u32 %s614_s13, 9 }
  0x16   : > { %s868_s24 = scalar_select %p699_p11, 1, 0 }
  0x17   : > { %s713_s30 = scalar_lea.hbm %s860_s0, %s401_s27  ;;  %s137_s3 = scalar_lea.vmem [#allocation2], %s384_s26 }
  0x18   : > { %s145_s4 = sshll.u32 %s137_s3, 4  ;;  %p719_p0 = pnand %p419_p13, %p682_p4  ;;  %s715_s4 = int_to_ptr.vmem [resolvable:$true] %s145_s4 }
  0x19   : > { %s134_s6 = scalar_lea.sflag [#allocation3], %s706_s25  ;;  %s472_s7 = scalar_lea.hbm %s713_s30, 512 }
  0x1a   : > { %p473_p2 = scmp.ne.s32.totalorder %s713_s30, %s472_s7  ;;  %p474_p3 = pneg %p719_p0 }
  0x1b   : > { %s477_s16 = scalar_lea.hbm %s860_s0, 1024  ;;  %p478_p4 = scmp.lt.u32.totalorder %s713_s30, %s860_s0 }
  0x1c   : > { %p475_p5 = pnand %p474_p3, %p473_p2  ;;  %p479_p7 = scmp.lt.u32.totalorder %s477_s16, %s472_s7 }
  0x1d   : > { %p481_p13 = scmp.lt.u32.totalorder %s472_s7, %s713_s30 }
  0x1e   : > { %p476_p6 = pneg %p475_p5  ;;  %p480_p10 = por %p479_p7, %p478_p4 }
  0x20   : > { %p482_p12 = por %p481_p13, %p480_p10 }
  0x22   : > { %p483_p1 = pnand %p482_p12, %p476_p6 }
  0x24   : > { %486 = shalt.err (!%p483_p1)
}
  0x25   : > { %s487_s20 = scalar_lea.vmem %s715_s4, 512  ;;  %s620_s26 = smov [#allocation2]  }
  0x26   : > { %p488_p2 = scmp.ne.s32.totalorder %s715_s4, %s487_s20  ;;  %s492_s27 = sshll.u32 %s620_s26, 4  ;;  %s493_s27 = int_to_ptr.vmem [resolvable:$false] %s492_s27 }
  0x27   : > { %s494_s28 = scalar_lea.vmem %s493_s27, 1024  ;;  %p495_p9 = scmp.lt.s32.totalorder %s715_s4, %s493_s27 }
  0x28   : > { %p490_p5 = pnand %p488_p2, %p474_p3  ;;  %p496_p4 = scmp.lt.s32.totalorder %s494_s28, %s487_s20 }
  0x2a   : > { %p491_p11 = pneg %p490_p5  ;;  %p497_p7 = por %p496_p4, %p495_p9 }
  0x2c   : > { %p498_p10 = pnand %p497_p7, %p491_p11 }
  0x2e   : > { %501 = shalt.err (!%p498_p10)
}
  0x2f   : > { %s621_s29 = smov 128   ;;  %s622_s3 = smov 8  }
  0x30   : > { %411 = dma.hbm_to_vmem [thread:$0]  (!%p719_p0), %s713_s30, 512, %s715_s4, %s134_s6, %s621_s29, %s621_s29, %s622_s3  }
  0x31   : > { %p172_p12 = scmp.lt.s32.totalorder %s618_s14, 3  ;;  %s387_s7 = sshll.u32 %s706_s25, 3 }
  0x32   : > { %s388_s8 = sshll.u32 %s614_s13, 7  ;;  %p870_p9 = scmp.ge.s32.totalorder %s618_s14, 1 }
  0x33   : > { %s764_s19 = scalar_lea.hbm %s861_s1, %s388_s8  ;;  %s159_s20 = scalar_lea.vmem [#allocation5], %s387_s7 }
  0x34   : > { %p757_p11 = pnand %p870_p9, %p172_p12  ;;  %s167_s26 = sshll.u32 %s159_s20, 4  ;;  %s168_s26 = int_to_ptr.vmem [resolvable:$true] %s167_s26 }
  0x35   : > { %s156_s30 = scalar_lea.sflag [#allocation6], %s706_s25  ;;  %s502_s4 = scalar_lea.hbm %s764_s19, 128 }
  0x36   : > { %s871_s15 = scalar_select %p757_p11, 1, 0 }
  0x37   : > { %p503_p1 = scmp.ne.s32.totalorder %s764_s19, %s502_s4  ;;  %s507_s28 = scalar_lea.hbm %s861_s1, 256 }
  0x38   : > { %p508_p2 = scmp.lt.u32.totalorder %s764_s19, %s861_s1  ;;  %p509_p5 = scmp.lt.u32.totalorder %s507_s28, %s502_s4 }
  0x39   : > { %p505_p6 = pnand %p503_p1, %p474_p3  ;;  %p511_p7 = scmp.lt.u32.totalorder %s502_s4, %s764_s19 }
  0x3a   : > { %p510_p4 = por %p509_p5, %p508_p2 }
  0x3b   : > { %p506_p13 = pneg %p505_p6 }
  0x3c   : > { %p512_p10 = por %p511_p7, %p510_p4 }
  0x3e   : > { %p513_p12 = pnand %p512_p10, %p506_p13 }
  0x40   : > { %516 = shalt.err (!%p513_p12)
}
  0x41   : > { %s517_s25 = scalar_lea.vmem %s168_s26, 128  ;;  %s623_s7 = smov [#allocation5]  }
  0x42   : > { %p518_p9 = scmp.ne.s32.totalorder %s168_s26, %s517_s25  ;;  %s522_s8 = sshll.u32 %s623_s7, 4  ;;  %s523_s8 = int_to_ptr.vmem [resolvable:$false] %s522_s8 }
  0x43   : > { %s524_s16 = scalar_lea.vmem %s523_s8, 256  ;;  %p525_p8 = scmp.lt.s32.totalorder %s168_s26, %s523_s8 }
  0x44   : > { %p520_p1 = pnand %p518_p9, %p474_p3  ;;  %p526_p11 = scmp.lt.s32.totalorder %s524_s16, %s517_s25 }
  0x46   : > { %p521_p6 = pneg %p520_p1  ;;  %p527_p2 = por %p526_p11, %p525_p8 }
  0x48   : > { %p528_p5 = pnand %p527_p2, %p521_p6 }
  0x4a   : > { %531 = shalt.err (!%p528_p5)
}
  0x4b   : > { %414 = dma.hbm_to_vmem [thread:$0]  (!%p719_p0), %s764_s19, 128, %s168_s26, %s156_s30  }
  0x4c   : > { %p872_p13 = scmp.ne.s32.totalorder %s871_s15, 0 }
  0x4d   : > { %s789_s18 = sand.u32 (!%p872_p13), 1, %s602_s10   ;;  %p873_p3 = scmp.ne.s32.totalorder (!%p872_p13), %s866_s21, 0 }
  0x4e   : > { %176 = sbr.rel (%p872_p13) target bundleno = 121 (0x79), region = 28  ;;  %s390_s20 = sshll.u32 (!%p872_p13), %s789_s18, 5 }
  0x4f   : > { %s179_s4 = scalar_lea.sflag (!%p872_p13), [#allocation3], %s789_s18  ;;  %s182_s6 = scalar_lea.vmem (!%p872_p13), [#allocation2], %s390_s20 }
  0x55   : > { %585 = dma.done.wait (%p873_p3), %s179_s4, 512  }
  0x56   : > { %587 = vsyncadd (%p873_p3), %s179_s4, 4294966784  ;;  %s391_s5 = sshll.u32 %s789_s18, 3  ;;  %s188_s15 = scalar_lea.sflag [#allocation6], %s789_s18 }
  0x57   : > { %s191_s19 = scalar_lea.vmem [#allocation5], %s391_s5 }
  0x58   : > { %589 = dma.done.wait (%p873_p3), %s188_s15, 128  }
  0x59   : > { %591 = vsyncadd (%p873_p3), %s188_s15, 4294967168  ;;  %v234_v0 = vlaneseq  ;;  %v229_v3 = vld [vmem:[%s191_s19] sm:$0xff]  ;;  %v227_v10 = vld [vmem:[%s182_s6 + $0x10] sm:$0xff]  ;;  %v624_v12 = vmov 0.0   ;;  %s398_s21 = sshll.u32 %s610_s12, 7  ;;  %s216_s26 = scalar_lea.vmem [#allocation7], %s391_s5 }
  0x5a   : > { %v225_v4 = vld [vmem:[%s182_s6] sm:$0xff]  ;;  %v230_v5 = vunpack.c.0.s8 %v229_v3  ;;  %v231_v6 = vunpack.c.1.s8 %v229_v3  ;;  %v232_v7 = vunpack.c.2.s8 %v229_v3  ;;  %v233_v8 = vunpack.c.3.s8 %v229_v3  ;;  %v226_v9 = vld [vmem:[%s182_s6 + $0x8] sm:$0xff]  ;;  %v228_v11 = vld [vmem:[%s182_s6 + $0x18] sm:$0xff]  ;;  %s277_s30 = sshll.u32 %s216_s26, 4  ;;  %s811_s29 = scalar_lea.hbm %s862_s2, %s398_s21  ;;  %s813_s30 = int_to_ptr.vmem [resolvable:$true] %s277_s30 }
  0x5b   : > { %v235_v1 = vand.u32 127, %v234_v0  ;;  %s264_s3 = scalar_lea.sflag [#allocation4], %s789_s18  ;;  %s532_s25 = scalar_lea.vmem %s813_s30, 128 }
  0x5c   : > { %p533_p8 = scmp.ne.s32.totalorder %s813_s30, %s532_s25  ;;  %p874_p0 = scmp.ne.s32.totalorder %s867_s22, 0 }
  0x5d   : > { %v236_v2 = vand.u32 1, %v235_v1  ;;  %s625_s12 = smov [#allocation7]  }
  0x5e   : > { %p534_p11 = pnand %p533_p8, %p874_p0  ;;  %s536_s7 = sshll.u32 %s625_s12, 4  ;;  %s537_s7 = int_to_ptr.vmem [resolvable:$false] %s536_s7 }
  0x5f   : > { %vm237_vm0 = vcmp.eq.s32.totalorder %v236_v2, %v230_v5  ;;  %vm238_vm1 = vcmp.eq.s32.totalorder %v236_v2, %v231_v6  ;;  %vm239_vm2 = vcmp.eq.s32.totalorder %v236_v2, %v232_v7  ;;  %vm240_vm3 = vcmp.eq.s32.totalorder %v236_v2, %v233_v8  ;;  %s538_s8 = scalar_lea.vmem %s537_s7, 256  ;;  %p539_p7 = scmp.lt.s32.totalorder %s813_s30, %s537_s7 }
  0x60   : > { %v393_v13 = vsel %vm237_vm0, 1.0, %v624_v12  ;;  %v394_v14 = vsel %vm238_vm1, 1.0, %v624_v12  ;;  %v395_v15 = vsel %vm239_vm2, 1.0, %v624_v12  ;;  %v396_v16 = vsel %vm240_vm3, 1.0, %v624_v12  ;;  %p535_p4 = pneg %p534_p11  ;;  %p540_p10 = scmp.lt.s32.totalorder %s538_s8, %s532_s25 }
  0x61   : > { %v249_v17 = vsub.f32 %v225_v4, %v393_v13  ;;  %v250_v18 = vsub.f32 %v226_v9, %v394_v14  ;;  %v251_v19 = vsub.f32 %v227_v10, %v395_v15  ;;  %v252_v20 = vsub.f32 %v228_v11, %v396_v16 }
  0x62   : > { %p541_p12 = por %p540_p10, %p539_p7 }
  0x63   : > { %v253_v21 = vmul.f32 %v249_v17, %v249_v17  ;;  %v254_v22 = vmul.f32 %v250_v18, %v250_v18  ;;  %v255_v23 = vmul.f32 %v251_v19, %v251_v19  ;;  %v256_v24 = vmul.f32 %v252_v20, %v252_v20 }
  0x64   : > { %p542_p9 = pnand %p541_p12, %p535_p4 }
  0x65   : > { %v258_v25 = vadd.f32 %v254_v22, %v253_v21 }
  0x67   : > { %v259_v26 = vadd.f32 %v258_v25, %v255_v23 }
  0x69   : > { %v260_v27 = vadd.f32 %v259_v26, %v256_v24 }
  0x6b   : > { %262 = vst [vmem:[%s216_s26] sm:$0xff] %v260_v27 }
  0x6c   : > { %545 = shalt.err (!%p542_p9)
}
  0x6d   : > { %s546_s16 = scalar_lea.hbm %s811_s29, 128  ;;  %s550_s4 = scalar_lea.hbm %s862_s2, 256 }
  0x6e   : > { %p547_p1 = scmp.ne.s32.totalorder %s811_s29, %s546_s16  ;;  %p551_p5 = scmp.lt.u32.totalorder %s811_s29, %s862_s2 }
  0x6f   : > { %p552_p13 = scmp.lt.u32.totalorder %s550_s4, %s546_s16  ;;  %p554_p8 = scmp.lt.u32.totalorder %s546_s16, %s811_s29 }
  0x70   : > { %p548_p6 = pnand %p547_p1, %p874_p0 }
  0x71   : > { %p553_p3 = por %p552_p13, %p551_p5 }
  0x72   : > { %p549_p2 = pneg %p548_p6 }
  0x73   : > { %p555_p11 = por %p554_p8, %p553_p3 }
  0x75   : > { %p556_p4 = pnand %p555_p11, %p549_p2 }
  0x77   : > { %559 = shalt.err (!%p556_p4)
}
  0x78   : > { %406 = dma.vmem_to_hbm [thread:$0]  (%p874_p0), %s813_s30, 128, %s811_s29, %s264_s3  }
  0x79 PF: > { %s289_s15 = sand.u32 1, %s598_s9   ;;  %p875_p7 = scmp.ne.s32.totalorder %s868_s24, 0 }
  0x7a   : > { %p876_p10 = scmp.ge.s32.totalorder %s618_s14, 2  ;;  %s290_s19 = scalar_lea.sflag [#allocation4], %s289_s15 }
  0x7c   : > { %p416_p12 = pnand %p876_p10, %p875_p7 }
  0x7e   : > { %593 = dma.done.wait (!%p416_p12), %s290_s19, 128  }
  0x7f   : > { %595 = vsyncadd (!%p416_p12), %s290_s19, 4294967168  ;;  %s21_s14 = sadd.s32 1, %s618_s14   ;;  %s877_s9 = smov %s602_s10 }
  0x80   : > { %p18_p9 = scmp.ge.s32.totalorder %s21_s14, 4   ;;  %s878_s10 = smov %s606_s11 }
  0x81   : > { %s879_s11 = smov %s697_s23  ;;  %s880_s12 = smov %s614_s13 }
  0x82   : > { %s881_s13 = smov %s883_s17  ;;  %20 = sbr.rel (!%p18_p9) target bundleno = 8 (0x8), region = 90 }
  0x89   :  { %295 = vsyncpa [#allocation3], 1 }
  0x8a   :  { %297 = vsyncpa [#allocation3 + $0x1], 1 }
  0x8b   :  { %298 = vsyncpa [#allocation6], 1 }
  0x8c   :  { %300 = vsyncpa [#allocation6 + $0x1], 1 }
  0x8d   :  { %301 = vsyncpa [#allocation4], 1 }
  0x8e   :  { %303 = vsyncpa [#allocation4 + $0x1], 1 }

</bundles_post_ra>
